<compile_context>
chip_gen: v7x
topology: tpu7x:2x2x1
jax: 0.10.0
libtpu: 0.0.40
codegen_flags: <defaults>
</compile_context>

<pallas_src>
import math
import functools

import jax
import jax.numpy as jnp
from jax import lax
from jax.experimental import pallas as pl
from jax.experimental.pallas import tpu as pltpu


def _qkv_attention_kernel(q_ref, k_ref, v_ref, o_ref, *, scale_sq, kv_len):
    # q_ref: [G, C, TQ]   k_ref / v_ref: [G, C, T]   o_ref: [G, C, TQ]
    q = q_ref[...]          # native dtype (bf16 stays bf16 for the MXU)
    k = k_ref[...]
    v = v_ref[...]

    # Fold both 1/ch**0.25 factors into q once: C*TQ multiplies, not a T*TQ pass.
    qs = q * jnp.asarray(scale_sq, dtype=q.dtype)

    # w[g, s, t] = sum_c k[g, c, s] * qs[g, c, t]   ->  [G, T(key), TQ(query)]
    # Scores laid out key-major so that the probability matrix below feeds the
    # second matmul in the MXU-natural orientation (no [T, T] XLU transpose).
    w = lax.dot_general(
        k, qs,
        dimension_numbers=(((1,), (1,)), ((0,), (0,))),
        preferred_element_type=jnp.float32)                 # [G, T, TQ] f32

    # Mask padded key positions (T was padded up to a lane multiple).
    if kv_len != k.shape[-1]:
        key_ids = lax.broadcasted_iota(jnp.int32, w.shape, dimension=1)
        w = jnp.where(key_ids < kv_len, w, -1e30)

    # Softmax over the key axis (axis 1), in float32 (as in the reference).
    w_max = jnp.max(w, axis=1, keepdims=True)               # [G, 1, TQ]
    w_exp = jnp.exp(w - w_max)
    w_sum = jnp.sum(w_exp, axis=1, keepdims=True)
    # EUP reciprocal + one Newton step (near-exact f32); replaces a divide pass
    # over the big tensor with a single fused multiply + cast.
    inv = pl.reciprocal(w_sum, approx=True)
    inv = inv * (2.0 - w_sum * inv)
    p = (w_exp * inv).astype(v.dtype)                        # [G, T, TQ]

    # a[g, c, t] = sum_s v[g, c, s] * p[g, s, t]  (MXU-natural, no transpose)
    a = lax.dot_general(
        v, p,
        dimension_numbers=(((2,), (1,)), ((0,), (0,))),
        preferred_element_type=jnp.float32)                  # [G, C, TQ] f32

    o_ref[...] = a.astype(o_ref.dtype)


def _working_set_bytes(g, ch, t_pad, tq, itemsize):
    """Approximate per-grid-step VMEM footprint for a head-group of size g."""
    # Double-buffered pipeline blocks: q + out (tq wide) and k + v (full T).
    io = 2 * g * ch * itemsize * (2 * tq + 2 * t_pad)
    # f32 scores + f32 exp + probabilities in the input dtype.
    scores = g * t_pad * tq * (2 * 4 + itemsize)
    # f32 result staging + row statistics.
    misc = g * ch * tq * 4 + 4 * g * tq * 4
    return io + scores + misc


def _pick_q_tile(ch, t_pad, itemsize, budget):
    """Largest query tile (multiple of 128 dividing t_pad, <=512) that fits."""
    cands = [tq for tq in range(128, t_pad + 1, 128) if t_pad % tq == 0]
    cands = sorted(cands, reverse=True)
    preferred = [tq for tq in cands if tq <= 512] or [cands[-1]]
    for tq in preferred:
        if _working_set_bytes(1, ch, t_pad, tq, itemsize) <= budget:
            return tq
    # TODO(synk): for extreme T even (g=1, tq=128) can exceed the budget;
    # switch to a kv-tiled online-softmax (flash) variant in that regime.
    return preferred[-1]


def _pick_group_size(b, ch, t_pad, tq, itemsize, budget, target_steps=8):
    """Largest divisor of b that fits VMEM and keeps the grid >= target_steps."""
    n_qt = t_pad // tq
    min_outer = min(b, max(1, -(-target_steps // n_qt)))   # ceil div
    best = 1
    for g in range(1, b + 1):
        if b % g:
            continue
        if b // g < min_outer:
            continue
        if _working_set_bytes(g, ch, t_pad, tq, itemsize) > budget:
            continue
        best = g
    return best


def qkv_attention_legacy(qkv, n_heads, *, group_size=None, q_tile=None):
    """Pallas implementation of QKVAttentionLegacy.forward.

    :param qkv: an [N, H*3*C, T] array of Qs, Ks and Vs.
    :param n_heads: number of attention heads H.
    :param group_size: optional override for head-batches per grid step.
    :param q_tile: optional override for the query tile (multiple of 128).
    :return: an [N, H*C, T] array after attention.
    """
    bs, width, length = qkv.shape
    assert width % (3 * n_heads) == 0
    ch = width // (3 * n_heads)
    b = bs * n_heads
    dtype = qkv.dtype
    itemsize = dtype.itemsize

    # q/k/v blocks are (G, ch, T); ch sits on the sublane-ish dim and must be a
    # multiple of the dtype's sublane tile so static block rows don't relayout.
    sublane = {4: 8, 2: 16, 1: 32}.get(itemsize, 8)
    assert ch % sublane == 0, (
        f"head_dim {ch} must be a multiple of {sublane} for dtype {dtype}")
    # TODO(synk): pad head_dim to the sublane tile to accept arbitrary ch.

    # Contiguous reshape (no data movement): [N, H*3*C, T] -> [N*H, 3*C, T].
    qkv_r = qkv.reshape(b, 3 * ch, length)

    # Pad T up to a lane multiple (128): lane-dense stores, aligned MXU dims.
    t_pad = -(-length // 128) * 128
    if t_pad != length:
        qkv_r = jnp.pad(qkv_r, ((0, 0), (0, 0), (0, t_pad - length)))

    scale_sq = 1.0 / math.sqrt(ch)      # (1/ch**0.25)**2, folded into q in-kernel

    # Generation-aware VMEM sizing: ~3/8 of capacity as the tiling budget,
    # ~5/8 as the scoped limit (v7x: 24/40 MiB, v5e/v6e: 48/80 MiB).
    try:
        vmem_cap = int(getattr(pltpu.get_tpu_info(), "vmem_capacity_bytes",
                               64 * 1024 * 1024))
    except Exception:  # CPU / interpret fallback
        vmem_cap = 64 * 1024 * 1024
    budget = (vmem_cap * 3) // 8
    vmem_limit = (vmem_cap * 5) // 8

    if q_tile is None:
        q_tile = _pick_q_tile(ch, t_pad, itemsize, budget)
    assert t_pad % q_tile == 0 and q_tile % 128 == 0
    if group_size is None:
        group_size = _pick_group_size(b, ch, t_pad, q_tile, itemsize, budget)
    assert b % group_size == 0, f"group_size {group_size} must divide {b}"

    n_qt = t_pad // q_tile
    grid = (b // group_size, n_qt)      # query-tile axis innermost: K/V resident

    kernel = functools.partial(_qkv_attention_kernel,
                               scale_sq=scale_sq, kv_len=length)

    cost = pl.CostEstimate(
        flops=4 * b * ch * length * length,
        transcendentals=b * length * length,
        bytes_accessed=4 * b * ch * length * itemsize)

    out = pl.pallas_call(
        kernel,
        out_shape=jax.ShapeDtypeStruct((b, ch, t_pad), dtype),
        grid_spec=pltpu.PrefetchScalarGridSpec(
            num_scalar_prefetch=0,
            grid=grid,
            in_specs=[
                # q: tiled along T; k/v: full-T blocks, constant in j (resident).
                pl.BlockSpec((group_size, ch, q_tile), lambda i, j: (i, 0, j)),
                pl.BlockSpec((group_size, ch, t_pad), lambda i, j: (i, 1, 0)),
                pl.BlockSpec((group_size, ch, t_pad), lambda i, j: (i, 2, 0)),
            ],
            out_specs=pl.BlockSpec((group_size, ch, q_tile),
                                   lambda i, j: (i, 0, j)),
        ),
        compiler_params=pltpu.CompilerParams(
            dimension_semantics=("parallel", "parallel"),
            vmem_limit_bytes=int(vmem_limit)),
        cost_estimate=cost,
    )(qkv_r, qkv_r, qkv_r)

    if t_pad != length:
        out = out[:, :, :length]
    return out.reshape(bs, n_heads * ch, length)


def _reference(qkv, n_heads):
    bs, width, length = qkv.shape
    ch = width // (3 * n_heads)
    qkv_r = qkv.reshape(bs * n_heads, 3 * ch, length)
    q, k, v = qkv_r[:, :ch], qkv_r[:, ch:2 * ch], qkv_r[:, 2 * ch:]
    scale = 1.0 / math.sqrt(math.sqrt(ch))
    w = jnp.einsum('bct,bcs->bts', q * scale, k * scale)
    w = jax.nn.softmax(w.astype(jnp.float32), axis=-1).astype(w.dtype)
    a = jnp.einsum('bts,bcs->bct', w, v)
    return a.reshape(bs, -1, length)


if __name__ == "__main__":
    # QKVAttentionLegacy has no learned parameters; only n_heads.
    key = jax.random.PRNGKey(0)

    # Config 1: tiny smoke test; T=16 -> padded to 128, exercises the key mask.
    N, H, C, T = 2, 2, 8, 16            # qkv: [2, 48, 16]
    qkv1 = jax.random.normal(key, (N, H * 3 * C, T), dtype=jnp.float32)
    ref1 = _reference(qkv1, H)

    out1 = jax.block_until_ready(qkv_attention_legacy(qkv1, n_heads=H))
    assert out1.shape == (N, H * C, T)
    assert jnp.allclose(out1, ref1, atol=1e-3, rtol=1e-3)

    # Force a smaller head-group to exercise the multi-step outer-grid path.
    out1b = jax.block_until_ready(qkv_attention_legacy(qkv1, n_heads=H,
                                                       group_size=2))
    assert jnp.allclose(out1b, ref1, atol=1e-3, rtol=1e-3)

    # Config 2: ragged T (530 -> padded 640) with multiple query tiles and
    # resident K/V across the inner grid axis.
    N2, H2, C2, T2 = 1, 3, 16, 530
    qkv2 = jax.random.normal(jax.random.PRNGKey(1),
                             (N2, H2 * 3 * C2, T2), dtype=jnp.float32)
    ref2 = _reference(qkv2, H2)
    out2 = jax.block_until_ready(qkv_attention_legacy(qkv2, n_heads=H2))
    assert out2.shape == (N2, H2 * C2, T2)
    assert jnp.allclose(out2, ref2, atol=1e-3, rtol=1e-3)

    print("KERNEL_OK")
</pallas_src>

<mosaic_0001>
module attributes {stable_mosaic.version = 11 : i64} {
  func.func @_qkv_attention_kernel(%arg0: i32, %arg1: i32, %arg2: memref<1x8x128xf32, #tpu.memory_space<vmem>>, %arg3: memref<1x8x128xf32, #tpu.memory_space<vmem>>, %arg4: memref<1x8x128xf32, #tpu.memory_space<vmem>>, %arg5: memref<1x8x128xf32, #tpu.memory_space<vmem>>) attributes {dimension_semantics = [#tpu.dimension_semantics<parallel>, #tpu.dimension_semantics<parallel>], iteration_bounds = array<i64: 4, 1>, scalar_prefetch = 0 : i64, scratch_operands = 0 : i64, tpu.core_type = #tpu.core_type<tc>, window_params = [{transform_indices = @transform_0, window_bounds = array<i64: 1, 8, 128>}, {transform_indices = @transform_1, window_bounds = array<i64: 1, 8, 128>}, {transform_indices = @transform_2, window_bounds = array<i64: 1, 8, 128>}, {transform_indices = @transform_3, window_bounds = array<i64: 1, 8, 128>}]} {
    %c0 = arith.constant 0 : index
    %c0_0 = arith.constant 0 : index
    %c0_1 = arith.constant 0 : index
    %0 = vector.load %arg2[%c0, %c0_0, %c0_1] : memref<1x8x128xf32, #tpu.memory_space<vmem>>, vector<1x8x128xf32>
    %c0_2 = arith.constant 0 : index
    %c0_3 = arith.constant 0 : index
    %c0_4 = arith.constant 0 : index
    %1 = vector.load %arg3[%c0_2, %c0_3, %c0_4] : memref<1x8x128xf32, #tpu.memory_space<vmem>>, vector<1x8x128xf32>
    %c0_5 = arith.constant 0 : index
    %c0_6 = arith.constant 0 : index
    %c0_7 = arith.constant 0 : index
    %2 = vector.load %arg4[%c0_5, %c0_6, %c0_7] : memref<1x8x128xf32, #tpu.memory_space<vmem>>, vector<1x8x128xf32>
    %cst = arith.constant 0.353553385 : f32
    %3 = vector.broadcast %cst : f32 to vector<1x8x128xf32>
    %4 = arith.mulf %0, %3 : vector<1x8x128xf32>
    %cst_8 = arith.constant dense<0.000000e+00> : vector<1x128x128xf32>
    %5 = tpu.matmul %1, %4, %cst_8 {dimension_numbers = #tpu.dot_dimension_numbers<[1], [1], [2], [2], [0, 0, 0, 2, 1, 2], [0], [0]>} : vector<1x8x128xf32>, vector<1x8x128xf32>, vector<1x128x128xf32> -> vector<1x128x128xf32>
    %6 = tpu.iota {dimensions = array<i32: 1>} : vector<1x128x128xi32>
    %c16_i32 = arith.constant 16 : i32
    %7 = vector.broadcast %c16_i32 : i32 to vector<1x128x128xi32>
    %8 = arith.cmpi slt, %6, %7 : vector<1x128x128xi32>
    %cst_9 = arith.constant -1.000000e+30 : f32
    %9 = vector.broadcast %cst_9 : f32 to vector<1x128x128xf32>
    %10 = arith.select %8, %5, %9 : vector<1x128x128xi1>, vector<1x128x128xf32>
    %cst_10 = arith.constant dense<0xFF800000> : vector<1x128xf32>
    %11 = vector.multi_reduction <maximumf>, %10, %cst_10 [1] : vector<1x128x128xf32> to vector<1x128xf32>
    %12 = vector.shape_cast %11 : vector<1x128xf32> to vector<1x1x128xf32>
    %13 = vector.broadcast %12 : vector<1x1x128xf32> to vector<1x128x128xf32>
    %14 = arith.subf %10, %13 : vector<1x128x128xf32>
    %15 = math.exp %14 : vector<1x128x128xf32>
    %cst_11 = arith.constant dense<0.000000e+00> : vector<1x128xf32>
    %16 = vector.multi_reduction <add>, %15, %cst_11 [1] : vector<1x128x128xf32> to vector<1x128xf32>
    %17 = vector.shape_cast %16 : vector<1x128xf32> to vector<1x1x128xf32>
    %18 = tpu.reciprocal %17 {approx = true} : vector<1x1x128xf32> -> vector<1x1x128xf32>
    %19 = arith.mulf %17, %18 : vector<1x1x128xf32>
    %cst_12 = arith.constant 2.000000e+00 : f32
    %20 = vector.broadcast %cst_12 : f32 to vector<1x1x128xf32>
    %21 = arith.subf %20, %19 : vector<1x1x128xf32>
    %22 = arith.mulf %18, %21 : vector<1x1x128xf32>
    %23 = vector.broadcast %22 : vector<1x1x128xf32> to vector<1x128x128xf32>
    %24 = arith.mulf %15, %23 : vector<1x128x128xf32>
    %cst_13 = arith.constant dense<0.000000e+00> : vector<1x8x128xf32>
    %25 = tpu.matmul %2, %24, %cst_13 {dimension_numbers = #tpu.dot_dimension_numbers<[2], [1], [1], [2], [0, 0, 0, 1, 1, 2], [0], [0]>} : vector<1x8x128xf32>, vector<1x128x128xf32>, vector<1x8x128xf32> -> vector<1x8x128xf32>
    %c0_14 = arith.constant 0 : index
    %c0_15 = arith.constant 0 : index
    %c0_16 = arith.constant 0 : index
    %26 = vector.load %arg5[%c0_14, %c0_15, %c0_16] : memref<1x8x128xf32, #tpu.memory_space<vmem>>, vector<1x8x128xf32>
    tpu.vector_store %arg5[%c0_14, %c0_15, %c0_16], %25 {strides = array<i32>} : memref<1x8x128xf32, #tpu.memory_space<vmem>>, vector<1x8x128xf32>,
    return
  }
  func.func @transform_0(%arg0: i32, %arg1: i32) -> (i32, i32, i32) {
    %c0_i32 = arith.constant 0 : i32
    %c0_i32_0 = arith.constant 0 : i32
    return %arg0, %c0_i32, %arg1 : i32, i32, i32
  }
  func.func @transform_1(%arg0: i32, %arg1: i32) -> (i32, i32, i32) {
    %c1_i32 = arith.constant 1 : i32
    %c0_i32 = arith.constant 0 : i32
    %c0_i32_0 = arith.constant 0 : i32
    return %arg0, %c1_i32, %c0_i32 : i32, i32, i32
  }
  func.func @transform_2(%arg0: i32, %arg1: i32) -> (i32, i32, i32) {
    %c2_i32 = arith.constant 2 : i32
    %c0_i32 = arith.constant 0 : i32
    %c0_i32_0 = arith.constant 0 : i32
    return %arg0, %c2_i32, %c0_i32 : i32, i32, i32
  }
  func.func @transform_3(%arg0: i32, %arg1: i32) -> (i32, i32, i32) {
    %c0_i32 = arith.constant 0 : i32
    %c0_i32_0 = arith.constant 0 : i32
    return %arg0, %c0_i32, %arg1 : i32, i32, i32
  }
}

</mosaic_0001>

<bundles_post_ra>
// kernel: tpu_custom_call.1
= control target key start
LH: loop header
LB: loop body
LE: loop exit
PB: predicated region body
PF: predicated region fallthrough
CT: control target
= control target key end

     0   :  { %s1597_s0 = inlined_call_operand.hbm [shape: f32[4,24,128], index: 0, kind: input, shape index: {}]   ;;  %s1598_s1 = inlined_call_operand.hbm [shape: f32[4,24,128], index: 1, kind: input, shape index: {}]   ;;  %s1599_s2 = inlined_call_operand.hbm [shape: f32[4,24,128], index: 2, kind: input, shape index: {}]   ;;  %s1600_s3 = inlined_call_operand.hbm [shape: f32[4,8,128], index: 3, kind: output, shape index: {}]  }
   0x1   :  { %1609 = sst [smem:[#allocation16_spill]] %s1597_s0 }
   0x2   :  { %1610 = sst [smem:[#allocation17_spill]] %s1598_s1 }
   0x3   :  { %8 = vsyncpa [#allocation3], 0 }
   0x4   :  { %10 = vsyncpa [#allocation3 + $0x1], 0 }
   0x5   :  { %11 = vsyncpa [#allocation6], 0 }
   0x6   :  { %13 = vsyncpa [#allocation6 + $0x1], 0 }
   0x7   :  { %14 = vsyncpa [#allocation4], 0 }
   0x8   :  { %16 = vsyncpa [#allocation4 + $0x1], 0  ;;  %s1327_s12 = smov 0   ;;  %s1329_s13 = smov 0  }
   0x9   :  { %s1331_s14 = smov 0   ;;  %s1333_s15 = smov 0  }
   0xa   :  { %s1335_s16 = smov 0   ;;  %s1337_s17 = smov 0  }
   0xb LB: > { %1611 = sst [smem:[#allocation12_spill]] %s1286_s14  ;;  %s1358_s18 = sadd.s32 4294967295, %s1298_s17   ;;  %s1298_s17 = sphi %s1337_s17, %s22_s17   ;;  %s1294_s16 = sphi %s1335_s16, %s1635_s16   ;;  %s1290_s15 = sphi %s1333_s15, %s1634_s15   ;;  %s1286_s14 = sphi %s1331_s14, %s1633_s14   ;;  %s1282_s13 = sphi %s1329_s13, %s1637_s13   ;;  %s1278_s12 = sphi %s1327_s12, %s1636_s12  }
   0xc   : > { %1612 = sst [smem:[#allocation13_spill]] %s1294_s16  ;;  %s883_s19 = sadd.s32 4294967294, %s1298_s17  }
   0xd   : > { %s34_s20 = sadd.s32 1, %s1294_s16  ;;  %s43_s21 = sadd.s32 1, %s1286_s14 }
   0xe   : > { %p36_p0 = scmp.ge.s32.totalorder %s34_s20, 4  ;;  %p50_p1 = scmp.ne.s32.totalorder %s1286_s14, %s1282_s13 }
   0xf   : > { %p51_p2 = scmp.eq.s32.totalorder %s1298_s17, 0  ;;  %p56_p3 = scmp.ne.s32.totalorder %s1282_s13, %s1278_s12 }
  0x10   : > { %s1639_s20 = smov (%p36_p0, %s34_s20), 0  ;;  %p57_p5 = scmp.eq.s32.totalorder %s1358_s18, 0 }
  0x11   : > { %1613 = sst [smem:[#allocation14_spill]] %s1639_s20  ;;  %p1370_p4 = por %p51_p2, %p50_p1 }
  0x12   : > { %s38_s23 = ssub.s32 %s1294_s16, %s1639_s20  ;;  %p134_p6 = scmp.eq.s32.totalorder %s1358_s18, 3 }
  0x13   : > { %p41_p7 = scmp.eq.s32.totalorder %s38_s23, 0  ;;  %p1378_p8 = por %p57_p5, %p56_p3 }
  0x14   : > { %p1382_p9 = por %p134_p6, %p50_p1  ;;  %p140_p10 = scmp.eq.s32.totalorder %s883_s19, 3 }
  0x15   : > { %s1615_s24 = scalar_select %p1378_p8, 1, 0 }
  0x16   : > { %s1616_s25 = scalar_select %p1382_p9, 1, 0 }
  0x17   : > { %s1387_s26 = scalar_select %p41_p7, %s1286_s14, %s43_s21  }
  0x18   : > { %p1389_p11 = por %p140_p10, %p56_p3  ;;  %p1059_p12 = scmp.lt.s32.totalorder %s1298_s17, 4 }
  0x19   : > { %1617 = sst [smem:[#allocation15_spill]] %s1387_s26  ;;  %s1601_s28 = sand.u32 1, %s1286_s14  }
  0x1a   : > { %s1618_s27 = scalar_select %p1389_p11, 1, 0 }
  0x1b   : > { %s1397_s29 = sshll.u32 %s1601_s28, 3  ;;  %s1400_s30 = smul.u32 384, %s1294_s16 }
  0x1c   : > { %p1404_p13 = pnand %p1059_p12, %p1370_p4  ;;  %s180_s5 = sand.u32 1, %s1298_s17  }
  0x1d   : > { %s1620_s1 = sld [smem:[#allocation17_spill]]  ;;  %s184_s10 = scalar_lea.vmem [#allocation5], %s1397_s29 }
  0x1e   : > { %s1619_s4 = scalar_select %p1404_p13, 1, 0 }
  0x1f   : > { %s193_s11 = sshll.u32 %s184_s10, 4  ;;  %s1419_s19 = scalar_lea.sflag [#allocation6], %s180_s5  ;;  %s1416_s11 = int_to_ptr.vmem [resolvable:$true] %s193_s11 }
  0x20   : > { %p1424_p2 = pneg %p1404_p13 }
  0x23   : > { %s793_s8 = scalar_lea.hbm %s1620_s1, %s1400_s30  ;;  %s1125_s7 = scalar_lea.hbm %s1620_s1, 1536 }
  0x24   : > { %s1413_s9 = scalar_lea.hbm %s793_s8, 128  ;;  %s1150_s21 = scalar_lea.hbm %s793_s8, 256 }
  0x25   : > { %p1121_p1 = scmp.ne.s32.totalorder %s1413_s9, %s1150_s21  ;;  %p1126_p5 = scmp.lt.u32.totalorder %s1413_s9, %s1620_s1 }
  0x26   : > { %p1127_p6 = scmp.lt.u32.totalorder %s1125_s7, %s1150_s21  ;;  %p1129_p10 = scmp.lt.u32.totalorder %s1150_s21, %s1413_s9 }
  0x27   : > { %p1123_p3 = pnand %p1424_p2, %p1121_p1 }
  0x28   : > { %p1128_p7 = por %p1127_p6, %p1126_p5 }
  0x29   : > { %p1124_p4 = pneg %p1123_p3 }
  0x2a   : > { %p1130_p12 = por %p1129_p10, %p1128_p7 }
  0x2c   : > { %p1131_p0 = pnand %p1130_p12, %p1124_p4 }
  0x2e   : > { %1134 = shalt.err (!%p1131_p0)
}
  0x2f   : > { %s1135_s5 = scalar_lea.vmem %s1416_s11, 128  ;;  %s1300_s8 = smov [#allocation5]  }
  0x30   : > { %p1136_p1 = scmp.ne.s32.totalorder %s1416_s11, %s1135_s5  ;;  %s1140_s23 = sshll.u32 %s1300_s8, 4  ;;  %s1141_s23 = int_to_ptr.vmem [resolvable:$false] %s1140_s23 }
  0x31   : > { %s1142_s28 = scalar_lea.vmem %s1141_s23, 256  ;;  %p1143_p9 = scmp.lt.s32.totalorder %s1416_s11, %s1141_s23 }
  0x32   : > { %p1138_p3 = pnand %p1136_p1, %p1424_p2  ;;  %p1144_p8 = scmp.lt.s32.totalorder %s1142_s28, %s1135_s5 }
  0x34   : > { %p1139_p11 = pneg %p1138_p3  ;;  %p1145_p5 = por %p1144_p8, %p1143_p9 }
  0x36   : > { %p1146_p6 = pnand %p1145_p5, %p1139_p11 }
  0x38   : > { %1149 = shalt.err (!%p1146_p6)
}
  0x39   : > { %1051 = dma.hbm_to_vmem [thread:$0]  (!%p1404_p13), %s1413_s9, 128, %s1416_s11, %s1419_s19  }
  0x3a   : > { %p218_p0 = scmp.lt.s32.totalorder %s1298_s17, 5  ;;  %p1622_p4 = scmp.ge.s32.totalorder %s1298_s17, 1 }
  0x3b   : > { %s1624_s0 = sld [smem:[#allocation16_spill]]  ;;  %s164_s5 = scalar_lea.vmem [#allocation2], %s1397_s29 }
  0x3c   : > { %p1451_p7 = pnand %p1622_p4, %p218_p0  ;;  %s173_s8 = sshll.u32 %s164_s5, 4  ;;  %s174_s8 = int_to_ptr.vmem [resolvable:$true] %s173_s8 }
  0x3d   : > { %s1625_s23 = sand.u32 1, %s1286_s14  }
  0x3e   : > { %s1623_s21 = scalar_select %p1451_p7, 1, 0 }
  0x3f   : > { %s161_s9 = scalar_lea.sflag [#allocation3], %s1625_s23 }
  0x41   : > { %s1459_s10 = scalar_lea.hbm %s1624_s0, %s1400_s30  ;;  %s1156_s6 = scalar_lea.hbm %s1624_s0, 1536 }
  0x42   : > { %s1151_s11 = scalar_lea.hbm %s1459_s10, 128  ;;  %p1157_p10 = scmp.lt.u32.totalorder %s1459_s10, %s1624_s0 }
  0x43   : > { %p1152_p8 = scmp.ne.s32.totalorder %s1459_s10, %s1151_s11  ;;  %p1158_p12 = scmp.lt.u32.totalorder %s1156_s6, %s1151_s11 }
  0x44   : > { %p1160_p3 = scmp.lt.u32.totalorder %s1151_s11, %s1459_s10 }
  0x45   : > { %p1154_p9 = pnand %p1152_p8, %p1424_p2  ;;  %p1159_p1 = por %p1158_p12, %p1157_p10 }
  0x47   : > { %p1155_p11 = pneg %p1154_p9  ;;  %p1161_p5 = por %p1160_p3, %p1159_p1 }
  0x49   : > { %p1162_p6 = pnand %p1161_p5, %p1155_p11 }
  0x4b   : > { %1165 = shalt.err (!%p1162_p6)
}
  0x4c   : > { %s1166_s5 = scalar_lea.vmem %s174_s8, 128  ;;  %s1301_s23 = smov [#allocation2]  }
  0x4d   : > { %p1167_p0 = scmp.ne.s32.totalorder %s174_s8, %s1166_s5  ;;  %s1171_s16 = sshll.u32 %s1301_s23, 4  ;;  %s1172_s16 = int_to_ptr.vmem [resolvable:$false] %s1171_s16 }
  0x4e   : > { %s1173_s1 = scalar_lea.vmem %s1172_s16, 256  ;;  %p1174_p9 = scmp.lt.s32.totalorder %s174_s8, %s1172_s16 }
  0x4f   : > { %p1169_p4 = pnand %p1167_p0, %p1424_p2  ;;  %p1175_p7 = scmp.lt.s32.totalorder %s1173_s1, %s1166_s5 }
  0x51   : > { %p1170_p8 = pneg %p1169_p4  ;;  %p1176_p13 = por %p1175_p7, %p1174_p9 }
  0x53   : > { %p1177_p10 = pnand %p1176_p13, %p1170_p8 }
  0x55   : > { %1180 = shalt.err (!%p1177_p10)
}
  0x56   : > { %p1626_p12 = scmp.ne.s32.totalorder %s1619_s4, 0  ;;  %s800_s28 = scalar_lea.hbm %s1599_s2, %s1400_s30 }
  0x57   : > { %s204_s6 = scalar_lea.vmem [#allocation7], %s1397_s29  ;;  %s801_s23 = scalar_lea.hbm %s800_s28, 256 }
  0x58   : > { %1048 = dma.hbm_to_vmem [thread:$0]  (!%p1626_p12), %s1459_s10, 128, %s174_s8, %s161_s9  }
  0x59   : > { %s213_s7 = sshll.u32 %s204_s6, 4  ;;  %s1211_s16 = scalar_lea.hbm %s800_s28, 384  ;;  %s214_s7 = int_to_ptr.vmem [resolvable:$true] %s213_s7 }
  0x5a   : > { %p1182_p11 = scmp.ne.s32.totalorder %s801_s23, %s1211_s16  ;;  %s1186_s0 = scalar_lea.hbm %s1599_s2, 1536 }
  0x5b   : > { %p1187_p1 = scmp.lt.u32.totalorder %s801_s23, %s1599_s2  ;;  %p1188_p3 = scmp.lt.u32.totalorder %s1186_s0, %s1211_s16 }
  0x5c   : > { %p1184_p13 = pnand %p1182_p11, %p1424_p2  ;;  %p1190_p6 = scmp.lt.u32.totalorder %s1211_s16, %s801_s23 }
  0x5d   : > { %p1189_p5 = por %p1188_p3, %p1187_p1 }
  0x5e   : > { %p1185_p7 = pneg %p1184_p13 }
  0x5f   : > { %p1191_p0 = por %p1190_p6, %p1189_p5 }
  0x61   : > { %p1192_p4 = pnand %p1191_p0, %p1185_p7 }
  0x63   : > { %1195 = shalt.err (!%p1192_p4)
}
  0x64   : > { %s1196_s29 = scalar_lea.vmem %s214_s7, 128  ;;  %s1302_s30 = smov [#allocation7]  }
  0x65   : > { %p1197_p8 = scmp.ne.s32.totalorder %s214_s7, %s1196_s29  ;;  %s1201_s10 = sshll.u32 %s1302_s30, 4  ;;  %s1202_s10 = int_to_ptr.vmem [resolvable:$false] %s1201_s10 }
  0x66   : > { %s1203_s8 = scalar_lea.vmem %s1202_s10, 256  ;;  %p1204_p11 = scmp.lt.s32.totalorder %s214_s7, %s1202_s10 }
  0x67   : > { %p1199_p9 = pnand %p1197_p8, %p1424_p2  ;;  %p1205_p13 = scmp.lt.s32.totalorder %s1203_s8, %s1196_s29 }
  0x69   : > { %p1200_p10 = pneg %p1199_p9  ;;  %p1206_p12 = por %p1205_p13, %p1204_p11 }
  0x6b   : > { %p1207_p1 = pnand %p1206_p12, %p1200_p10 }
  0x6d   : > { %1210 = shalt.err (!%p1207_p1)
}
  0x6e   : > { %p1627_p3 = scmp.ne.s32.totalorder %s1619_s4, 0  ;;  %p1628_p7 = scmp.ne.s32.totalorder %s1623_s21, 0 }
  0x6f   : > { %s1502_s0 = sand.u32 (!%p1628_p7), 1, %s1282_s13   ;;  %p1629_p2 = scmp.ne.s32.totalorder (!%p1628_p7), %s1615_s24, 0 }
  0x70   : > { %1054 = dma.hbm_to_vmem [thread:$0]  (!%p1627_p3), %s801_s23, 128, %s214_s7, %s1419_s19  }
  0x71   : > { %222 = sbr.rel (%p1628_p7) target bundleno = 829 (0x33d), region = 32  ;;  %s1505_s14 = sshll.u32 (!%p1628_p7), %s1502_s0, 3 }
  0x72   : > { %s225_s26 = scalar_lea.sflag (!%p1628_p7), [#allocation3], %s1502_s0  ;;  %s228_s22 = scalar_lea.vmem (!%p1628_p7), [#allocation2], %s1505_s14 }
  0x78   : > { %1265 = dma.done.wait (%p1629_p2), %s225_s26, 128  }
  0x79   : > { %1267 = vsyncadd (%p1629_p2), %s225_s26, 4294967168  ;;  %s233_s4 = sand.u32 1, %s1358_s18   ;;  %s237_s21 = scalar_lea.vmem [#allocation5], %s1505_s14 }
  0x7a   : > { %s234_s19 = scalar_lea.sflag [#allocation6], %s233_s4 }
  0x7b   : > { %1269 = dma.done.wait (%p1629_p2), %s234_s19, 256  }
  0x7c   : > { %1271 = vsyncadd (%p1629_p2), %s234_s19, 4294967040  ;;  %v280_v0 = vld [vmem:[%s237_s21] sm:$0xff]  ;;  %v279_v1 = vld [vmem:[%s228_s22] sm:$0xff]  ;;  %vm315_vm0 = vcmask 64512   ;;  %v1303_v6 = vmov 0.0|0.0   ;;  %vm1304_vm1 = vmmov 0  }
  0x7d   : > { %283 = vxpose.xlu0.b32.start.end [1/1] (short) %v280_v0, 128  ;;  %v282_v2 = vmul.f32 0.35355338, %v279_v1  ;;  %1012 = vmatprep.subr.bf16.mxu1 %v1303_v6  ;;  %v1305_v26 = vmov 0.0   ;;  %s246_s18 = scalar_lea.vmem [#allocation7], %s1505_s14  ;;  %s278_s24 = scalar_lea.vmem [#allocation8], %s1505_s14 }
  0x7e   : > { %1009 = vmatprep.mubr.msk.f32.mxu1 %vm1304_vm1, %v1305_v26  ;;  %s754_s9 = sshll.u32 %s278_s24, 4  ;;  %s914_s20 = sshll.u32 %s1290_s15, 7  ;;  %s1546_s9 = int_to_ptr.vmem [resolvable:$true] %s754_s9 }
  0x7f   : > { %951 = vmatprep.subr.mxu0 %v282_v2  ;;  %s1551_s6 = scalar_lea.hbm %s1600_s3, %s914_s20  ;;  %s740_s7 = scalar_lea.sflag [#allocation4], %s1502_s0 }
  0x80   : > { %952 = vmatpush3.msra.mxu0 %v282_v2  ;;  %s1212_s23 = scalar_lea.vmem %s1546_s9, 128  ;;  %p1630_p5 = scmp.ne.s32.totalorder %s1616_s25, 0 }
  0x81   : > { %p1213_p12 = scmp.ne.s32.totalorder %s1546_s9, %s1212_s23  ;;  %s1306_s15 = smov [#allocation8]  }
  0x82   : > { %s1216_s16 = sshll.u32 %s1306_s15, 4  ;;  %s1217_s16 = int_to_ptr.vmem [resolvable:$false] %s1216_s16 }
  0x83   : > { %p1214_p6 = pnand %p1213_p12, %p1630_p5  ;;  %s1218_s5 = scalar_lea.vmem %s1217_s16, 256 }
  0x84   : > { %p1219_p4 = scmp.lt.s32.totalorder %s1546_s9, %s1217_s16  ;;  %p1220_p8 = scmp.lt.s32.totalorder %s1218_s5, %s1212_s23 }
  0x85   : > { %p1215_p0 = pneg %p1214_p6 }
  0x86   : > { %p1221_p9 = por %p1220_p8, %p1219_p4 }
  0x88   : > { %p1222_p10 = pnand %p1221_p9, %p1215_p0 }
  0xfd   : > { %v299_v3 = vpop.trf.xlu0 }
  0xfe   : > { %953 = vmatprep.mubr.msk.f32.mxu0 %vm315_vm0, %v299_v3 }
 0x101   : > { %v300_v4 = vpop.trf.xlu0 }
 0x102   : > { %954 = vmatmul.mubr.msk.f32.vlgmr.msra.gmra.mrb[0].mxu0 %vm315_vm0, %v300_v4 }
 0x105   : > { %v301_v5 = vpop.trf.xlu0 }
 0x106   : > { %956 = vmatprep.mubr.msk.f32.mxu0 %vm315_vm0, %v301_v5 }
 0x109   : > { %v302_v7 = vpop.trf.xlu0 }
 0x10a   : > { %957 = vmatmul.mubr.msk.f32.gmra.mrb[2].mxu0 %vm315_vm0, %v302_v7 }
 0x10d   : > { %v303_v8 = vpop.trf.xlu0 }
 0x10e   : > { %959 = vmatprep.mubr.msk.f32.mxu0 %vm315_vm0, %v303_v8 }
 0x111   : > { %v304_v9 = vpop.trf.xlu0 }
 0x112   : > { %960 = vmatmul.mubr.msk.f32.gmra.mrb[4].mxu0 %vm315_vm0, %v304_v9 }
 0x115   : > { %v305_v10 = vpop.trf.xlu0 }
 0x116   : > { %962 = vmatprep.mubr.msk.f32.mxu0 %vm315_vm0, %v305_v10 }
 0x119   : > { %v306_v11 = vpop.trf.xlu0 }
 0x11a   : > { %963 = vmatmul.mubr.msk.f32.gmra.mrb[6].mxu0 %vm315_vm0, %v306_v11 }
 0x11d   : > { %v307_v12 = vpop.trf.xlu0 }
 0x11e   : > { %965 = vmatprep.mubr.msk.f32.mxu0 %vm315_vm0, %v307_v12 }
 0x121   : > { %v308_v13 = vpop.trf.xlu0 }
 0x122   : > { %966 = vmatmul.mubr.msk.f32.gmra.mrb[8].mxu0 %vm315_vm0, %v308_v13  ;;  %v281_v13 = vld [vmem:[%s246_s18] sm:$0xff] }
 0x125   : > { %v309_v14 = vpop.trf.xlu0 }
 0x126   : > { %968 = vmatprep.mubr.msk.f32.mxu0 %vm315_vm0, %v309_v14 }
 0x129   : > { %v310_v15 = vpop.trf.xlu0 }
 0x12a   : > { %969 = vmatmul.mubr.msk.f32.gmra.mrb[10].mxu0 %vm315_vm0, %v310_v15 }
 0x12d   : > { %v311_v16 = vpop.trf.xlu0 }
 0x12e   : > { %971 = vmatprep.mubr.msk.f32.mxu0 %vm315_vm0, %v311_v16 }
 0x131   : > { %v312_v17 = vpop.trf.xlu0 }
 0x132   : > { %972 = vmatmul.mubr.msk.f32.gmra.mrb[12].mxu0 %vm315_vm0, %v312_v17 }
 0x135   : > { %v313_v18 = vpop.trf.xlu0 }
 0x136   : > { %974 = vmatprep.mubr.msk.f32.mxu0 %vm315_vm0, %v313_v18 }
 0x139   : > { %v314_v24 = vpop.trf.xlu0 }
 0x13a   : > { %975 = vmatmul.mubr.msk.f32.gmra.mrb[14].mxu0 %vm315_vm0, %v314_v24 }
 0x1d5   : > { %v955_v19 = vpop.f32.mrb[0].mxu0 }
 0x1d6   : > { %v559_v20 = vmax.f32 %v955_v19, -1e+30  ;;  %v430_v21 = vpop.f32.mrb[1].mxu0 }
 0x1d7   : > { %v558_v22 = vmax.f32 %v430_v21, -1e+30 }
 0x1d8   : > { %v563_v23 = vmax.f32 %v559_v20, -1e+30 }
 0x1d9   : > { %v562_v25 = vmax.f32 %v558_v22, -1e+30 }
 0x1da   : > { %v567_v27 = vmax.f32 %v563_v23, -1e+30 }
 0x1db   : > { %v566_v28 = vmax.f32 %v562_v25, -1e+30 }
 0x1dd   : > { %v570_v29 = vmax.f32 %v566_v28, %v567_v27  ;;  %v958_v14 = vpop.f32.mrb[2].mxu0 }
 0x1de   : > { %v440_v15 = vpop.f32.mrb[3].mxu0 }
 0x1df   : > { %v572_v30 = vmax.f32 %v570_v29, -1e+30 }
 0x1e1   : > { %v573_v31 = vrot.slane %v572_v30, 4 }
 0x1e3   : > { %v574_v32 = vmax.f32 %v572_v30, %v573_v31 }
 0x1e5   : > { %v575_v33 = vrot.slane %v574_v32, 2  ;;  %v961_v16 = vpop.f32.mrb[4].mxu0 }
 0x1e6   : > { %v450_v17 = vpop.f32.mrb[5].mxu0 }
 0x1e7   : > { %v576_v34 = vmax.f32 %v574_v32, %v575_v33 }
 0x1e9   : > { %v577_v35 = vrot.slane %v576_v34, 1 }
 0x1eb   : > { %v578_v36 = vmax.f32 %v576_v34, %v577_v35 }
 0x1ed   : > { %v579_v37 = vsub.f32 %v430_v21, %v578_v36  ;;  %v580_v38 = vsub.f32 %v955_v19, %v578_v36  ;;  %v581_v39 = vsub.f32 -1e+30, %v578_v36  ;;  %v964_v18 = vpop.f32.mrb[6].mxu0 }
 0x1ee   : > { %v460_v19 = vpop.f32.mrb[7].mxu0 }
 0x1ef   : > { %v595_v40 = vmul.f32 1.442695, %v579_v37  ;;  %v597_v41 = vmul.f32 1.442695, %v580_v38  ;;  %v599_v42 = vmul.f32 1.442695, %v581_v39 }
 0x1f1   : > { %1112 = vpow2.f32 %v595_v40 }
 0x1f2   : > { %1114 = vpow2.f32 %v597_v41 }
 0x1f3   : > { %1116 = vpow2.f32 %v599_v42 }
 0x1f5   : > { %v967_v20 = vpop.f32.mrb[8].mxu0 }
 0x1f6   : > { %v470_v21 = vpop.f32.mrb[9].mxu0 }
 0x1fb   : > { %v1113_v43 = vpop.eup %1112 }
 0x1fc   : > { %v1115_v44 = vpop.eup %1114 }
 0x1fd   : > { %v627_v45 = vadd.f32 %v1115_v44, %v1113_v43  ;;  %v1117_v46 = vpop.eup %1116  ;;  %v970_v22 = vpop.f32.mrb[10].mxu0 }
 0x1fe   : > { %v480_v23 = vpop.f32.mrb[11].mxu0 }
 0x1ff   : > { %v628_v47 = vadd.f32 %v1117_v46, %v627_v45 }
 0x201   : > { %v629_v48 = vadd.f32 %v1117_v46, %v628_v47 }
 0x203   : > { %v630_v49 = vadd.f32 %v1117_v46, %v629_v48 }
 0x205   : > { %v631_v50 = vadd.f32 %v1117_v46, %v630_v49  ;;  %v973_v24 = vpop.f32.mrb[12].mxu0 }
 0x207   : > { %v632_v51 = vadd.f32 %v1117_v46, %v631_v50 }
 0x209   : > { %v633_v52 = vadd.f32 %v1117_v46, %v632_v51 }
 0x20b   : > { %v634_v53 = vadd.f32 %v1117_v46, %v633_v52 }
 0x20d   : > { %v635_v54 = vadd.f32 %v1117_v46, %v634_v53 }
 0x20f   : > { %v636_v55 = vadd.f32 %v1117_v46, %v635_v54 }
 0x211   : > { %v637_v56 = vadd.f32 %v1117_v46, %v636_v55 }
 0x213   : > { %v638_v57 = vadd.f32 %v1117_v46, %v637_v56 }
 0x215   : > { %v639_v58 = vadd.f32 %v1117_v46, %v638_v57 }
 0x217   : > { %v640_v59 = vadd.f32 %v1117_v46, %v639_v58 }
 0x219   : > { %v641_v60 = vadd.f32 %v1117_v46, %v640_v59 }
 0x21b   : > { %v642_v61 = vrot.slane %v641_v60, 4 }
 0x21d   : > { %v643_v62 = vadd.f32 %v642_v61, %v641_v60 }
 0x21f   : > { %v644_v63 = vrot.slane %v643_v62, 2 }
 0x221   : > { %v645_v0 = vadd.f32 %v644_v63, %v643_v62 }
 0x223   : > { %v646_v1 = vrot.slane %v645_v0, 1 }
 0x225   : > { %v647_v2 = vadd.f32 %v646_v1, %v645_v0 }
 0x227   : > { %1118 = vrcp.f32 %v647_v2 }
 0x231   : > { %v1119_v3 = vpop.eup %1118 }
 0x232   : > { %v649_v4 = vmul.f32 %v1119_v3, %v647_v2 }
 0x234   : > { %v650_v5 = vsub.f32 2.0, %v649_v4 }
 0x236   : > { %v651_v7 = vmul.f32 %v1119_v3, %v650_v5 }
 0x238   : > { %v652_v8 = vmul.f32 %v1113_v43, %v651_v7  ;;  %v653_v9 = vmul.f32 %v1115_v44, %v651_v7  ;;  %v654_v10 = vmul.f32 %v1117_v46, %v651_v7 }
 0x23a   : > { %v1013_v11 = vpack.c.bf16 %v653_v9, %v652_v8  ;;  %v1016_v12 = vpack.c.bf16 %v654_v10, %v654_v10 }
 0x23c   : > { %1014 = vmatpush3.bf16.msra.mxu1 %v1013_v11 }
 0x23d   : > { %1015 = vmatprep.subr.bf16.mxu1 %v1303_v6 }
 0x240   : > { %1017 = vmatpush3.bf16.msra.mxu1 %v1016_v12 }
 0x241   : > { %1018 = vmatprep.subr.bf16.mxu1 %v1303_v6 }
 0x244   : > { %1020 = vmatpush3.bf16.msra.mxu1 %v1016_v12 }
 0x245   : > { %1021 = vmatprep.subr.bf16.mxu1 %v1303_v6 }
 0x248   : > { %1023 = vmatpush3.bf16.msra.mxu1 %v1016_v12 }
 0x249   : > { %1024 = vmatprep.subr.bf16.mxu1 %v1303_v6 }
 0x24c   : > { %1026 = vmatpush3.bf16.msra.mxu1 %v1016_v12 }
 0x24d   : > { %1027 = vmatprep.subr.bf16.mxu1 %v1303_v6 }
 0x250   : > { %1029 = vmatpush3.bf16.msra.mxu1 %v1016_v12 }
 0x251   : > { %1030 = vmatprep.subr.bf16.mxu1 %v1303_v6 }
 0x254   : > { %1032 = vmatpush3.bf16.msra.mxu1 %v1016_v12 }
 0x255   : > { %1033 = vmatprep.subr.bf16.mxu1 %v1303_v6  ;;  %v490_v6 = vpop.f32.mrb[13].mxu0 }
 0x256   : > { %v976_v25 = vpop.f32.mrb[14].mxu0 }
 0x257   : > { %v500_v26 = vpop.f32.mrb[15].mxu0 }
 0x258   : > { %1035 = vmatpush3.bf16.msra.mxu1 %v1016_v12 }
 0x25b   : > { %1010 = vmatmul.mubr.f32.vlgmr.msra.gmra.mrb[0].mxu1 %v281_v13 }
 0x32e   : > { %v734_v27 = vpop.f32.mrb[0].mxu1 }
 0x32f   : > { %738 = vst [vmem:[%s278_s24] sm:$0xff] %v734_v27  ;;  %v1011_v28 = vpop.f32.mrb[1].mxu1 }
 0x330   : > { %1225 = shalt.err (!%p1222_p10)
}
 0x331   : > { %s1226_s1 = scalar_lea.hbm %s1551_s6, 128  ;;  %s1230_s10 = scalar_lea.hbm %s1600_s3, 512 }
 0x332   : > { %p1227_p11 = scmp.ne.s32.totalorder %s1551_s6, %s1226_s1  ;;  %p1231_p3 = scmp.lt.u32.totalorder %s1551_s6, %s1600_s3 }
 0x333   : > { %p1232_p7 = scmp.lt.u32.totalorder %s1230_s10, %s1226_s1  ;;  %p1234_p12 = scmp.lt.u32.totalorder %s1226_s1, %s1551_s6 }
 0x334   : > { %p1228_p13 = pnand %p1227_p11, %p1630_p5 }
 0x335   : > { %p1233_p2 = por %p1232_p7, %p1231_p3 }
 0x336   : > { %p1229_p1 = pneg %p1228_p13 }
 0x337   : > { %p1235_p6 = por %p1234_p12, %p1233_p2 }
 0x339   : > { %p1236_p0 = pnand %p1235_p6, %p1229_p1 }
 0x33b   : > { %1239 = shalt.err (!%p1236_p0)
}
 0x33c   : > { %1043 = dma.vmem_to_hbm [thread:$0]  (%p1630_p5), %s1546_s9, 128, %s1551_s6, %s740_s7  }
 0x33d PF: > { %p1060_p4 = scmp.ge.s32.totalorder %s1298_s17, 2  ;;  %s766_s14 = sand.u32 1, %s1278_s12  }
 0x33e   : > { %p1631_p8 = scmp.ne.s32.totalorder %s1618_s27, 0  ;;  %s767_s26 = scalar_lea.sflag [#allocation4], %s766_s14 }
 0x340   : > { %p1056_p9 = pnand %p1060_p4, %p1631_p8 }
 0x342   : > { %1273 = dma.done.wait (!%p1056_p9), %s767_s26, 128  }
 0x343   : > { %1275 = vsyncadd (!%p1056_p9), %s767_s26, 4294967168  ;;  %s22_s17 = sadd.s32 1, %s1298_s17   ;;  %s1632_s22 = sld [smem:[#allocation12_spill]] }
 0x344   : > { %p19_p10 = scmp.ge.s32.totalorder %s22_s17, 6   ;;  %s1633_s14 = sld [smem:[#allocation15_spill]] }
 0x345   : > { %s1634_s15 = sld [smem:[#allocation13_spill]]  ;;  %s1635_s16 = sld [smem:[#allocation14_spill]] }
 0x346   : > { %s1636_s12 = smov %s1282_s13  ;;  %21 = sbr.rel (!%p19_p10) target bundleno = 11 (0xb), region = 101 }
 0x349   : > { %s1637_s13 = smov %s1632_s22 }
 0x34d   :  { %772 = vsyncpa [#allocation3], 1 }
 0x34e   :  { %774 = vsyncpa [#allocation3 + $0x1], 1 }
 0x34f   :  { %775 = vsyncpa [#allocation6], 1 }
 0x350   :  { %777 = vsyncpa [#allocation6 + $0x1], 1 }
 0x351   :  { %778 = vsyncpa [#allocation4], 1 }
 0x352   :  { %780 = vsyncpa [#allocation4 + $0x1], 1 }

</bundles_post_ra>
